<compile_context>
chip_gen: v5e
topology: v5e:2x2
jax: 0.10.0
libtpu: 0.0.40
codegen_flags: <defaults>
</compile_context>

<pallas_src>
import functools

import jax
import jax.numpy as jnp
from jax.experimental import pallas as pl
from jax.experimental.pallas import tpu as pltpu


def _rmsnorm_kernel(x_ref, w_ref, o_ref, *, eps):
    # x_ref: (tile_rows, H), w_ref: (1, H), o_ref: (tile_rows, H)
    x = x_ref[...].astype(jnp.float32)
    w = w_ref[...].astype(jnp.float32)
    ms = jnp.mean(x * x, axis=-1, keepdims=True)
    inv = jax.lax.rsqrt(ms + eps)          # EUP op: hidden under the mem traffic
    o_ref[...] = (x * inv * w).astype(o_ref.dtype)


def _rmsnorm_folded_kernel(x_ref, w_ref, p_ref, o_ref, *, eps):
    # Lane-folded variant: each 128-lane row holds `g` independent rows of the
    # original (rows, hidden) problem. p_ref is a (W, W) block-diagonal
    # projection with entries 1/hidden, so (x*x) @ p broadcasts each segment's
    # mean(x**2) back over its own lanes. Loads/stores stay unmasked and
    # lane-dense; the tiny matmul rides the otherwise-idle MXU slot.
    x = x_ref[...].astype(jnp.float32)
    w = w_ref[...].astype(jnp.float32)
    ms = jnp.dot(x * x, p_ref[...],
                 preferred_element_type=jnp.float32,
                 precision=jax.lax.Precision.HIGHEST)
    inv = jax.lax.rsqrt(ms + eps)
    o_ref[...] = (x * inv * w).astype(o_ref.dtype)


def rmsnorm(x, weight, eps=1e-6, tile_rows=None):
    """RMSNorm over the last dim of x, scaled by `weight` (shape: (hidden,))."""
    orig_shape = x.shape
    hidden = int(orig_shape[-1])
    assert weight.shape == (hidden,)

    rows = 1
    for d in orig_shape[:-1]:
        rows *= int(d)

    # Lane folding for small hidden sizes: pack `fold` consecutive rows into a
    # single 128-lane row. Falls back to the plain path if rows don't divide.
    fold = 1
    if hidden < 128 and 128 % hidden == 0:
        g = 128 // hidden
        if rows % g == 0:
            fold = g
    width = hidden * fold
    rows2 = rows // fold

    x2d = x.reshape(rows2, width)                 # contiguous reshape: free
    w2d = jnp.tile(weight, fold).reshape(1, width)

    itemsize = jnp.dtype(x.dtype).itemsize
    sublane = max(8, 32 // itemsize)              # 8 (f32) / 16 (bf16) / 32 (int8)

    # Tile sizing: in + out, double-buffered, inside a ~24 MiB budget.
    if tile_rows is None:
        budget = 24 << 20
        tile_rows = budget // (4 * width * itemsize)
        tile_rows = min(int(tile_rows), 1024)
    tile_rows = max(1, int(tile_rows))
    if tile_rows >= rows2:
        tile_rows = rows2                         # single full-height block
    else:
        tile_rows = max(sublane, (tile_rows // sublane) * sublane)

    grid = (pl.cdiv(rows2, tile_rows),)

    tile_bytes = tile_rows * width * itemsize
    aux_bytes = (width * width * 4 if fold > 1 else 0) + 2 * width * itemsize
    vmem_limit = 4 * tile_bytes + aux_bytes + (4 << 20)
    vmem_limit = max(16 << 20, min(vmem_limit, 48 << 20))

    x_spec = pl.BlockSpec((tile_rows, width), lambda i: (i, 0))
    w_spec = pl.BlockSpec((1, width), lambda i: (0, 0))     # constant idx: fetched once
    out_spec = pl.BlockSpec((tile_rows, width), lambda i: (i, 0))
    compiler_params = pltpu.CompilerParams(
        dimension_semantics=("parallel",),   # lets v7x shard rows over both TCs
        vmem_limit_bytes=int(vmem_limit),
    )
    out_shape = jax.ShapeDtypeStruct((rows2, width), x.dtype)

    if fold > 1:
        seg = jnp.arange(width, dtype=jnp.int32) // hidden
        proj = (seg[:, None] == seg[None, :]).astype(jnp.float32) / float(hidden)
        out = pl.pallas_call(
            functools.partial(_rmsnorm_folded_kernel, eps=eps),
            out_shape=out_shape,
            grid_spec=pltpu.PrefetchScalarGridSpec(
                num_scalar_prefetch=0,
                grid=grid,
                in_specs=[x_spec, w_spec,
                          pl.BlockSpec((width, width), lambda i: (0, 0))],
                out_specs=out_spec,
            ),
            compiler_params=compiler_params,
        )(x2d, w2d, proj)
    else:
        out = pl.pallas_call(
            functools.partial(_rmsnorm_kernel, eps=eps),
            out_shape=out_shape,
            grid_spec=pltpu.PrefetchScalarGridSpec(
                num_scalar_prefetch=0,
                grid=grid,
                in_specs=[x_spec, w_spec],
                out_specs=out_spec,
            ),
            compiler_params=compiler_params,
        )(x2d, w2d)

    return out.reshape(orig_shape)


def rmsnorm_ref(x, weight, eps=1e-6):
    x32 = x.astype(jnp.float32)
    rms = jnp.sqrt(jnp.mean(x32 * x32, axis=-1, keepdims=True) + eps)
    return ((x32 / rms) * weight.astype(jnp.float32)).astype(x.dtype)


if __name__ == "__main__":
    key = jax.random.PRNGKey(0)
    kx1, kx2, kx3 = jax.random.split(key, 3)
    eps = 1e-6

    # Case 1: the module's config (hidden_size=32) -> exercises the lane-folded path.
    hidden = 32
    batch, seq = 2, 16
    x = jax.random.normal(kx1, (batch, seq, hidden), dtype=jnp.float32)
    # PyTorch initializes weight to ones; perturb deterministically so scale matters.
    w = jnp.ones((hidden,), jnp.float32) + 0.01 * jnp.arange(hidden, dtype=jnp.float32)
    out = jax.block_until_ready(rmsnorm(x, w, eps=eps))
    ref = rmsnorm_ref(x, w, eps=eps)
    assert out.shape == x.shape
    assert jnp.allclose(out, ref, atol=2e-4, rtol=2e-4), "folded-path mismatch vs reference"

    # Case 2: lane-aligned hidden size -> exercises the plain (unfolded) path.
    hidden2 = 256
    x2 = jax.random.normal(kx2, (batch, seq, hidden2), dtype=jnp.float32)
    w2 = jnp.ones((hidden2,), jnp.float32) + 0.001 * jnp.arange(hidden2, dtype=jnp.float32)
    out2 = jax.block_until_ready(rmsnorm(x2, w2, eps=eps))
    ref2 = rmsnorm_ref(x2, w2, eps=eps)
    assert out2.shape == x2.shape
    assert jnp.allclose(out2, ref2, atol=1e-5, rtol=1e-5), "plain-path mismatch vs reference"

    # Case 3: bf16 input, small row-tile forcing a multi-step (and partial) grid.
    x3 = jax.random.normal(kx3, (batch, seq, hidden2), dtype=jnp.bfloat16)
    out3 = jax.block_until_ready(rmsnorm(x3, w2, eps=eps, tile_rows=16))
    ref3 = rmsnorm_ref(x3, w2, eps=eps)
    assert out3.shape == x3.shape
    assert jnp.allclose(out3.astype(jnp.float32), ref3.astype(jnp.float32),
                        atol=1e-2, rtol=1e-2), "bf16 tiled-path mismatch vs reference"

    print("KERNEL_OK")
</pallas_src>

<mosaic_0001>
module attributes {stable_mosaic.version = 11 : i64} {
  func.func @_rmsnorm_folded_kernel(%arg0: i32, %arg1: memref<8x128xf32, #tpu.memory_space<vmem>>, %arg2: memref<1x128xf32, #tpu.memory_space<vmem>>, %arg3: memref<128x128xf32, #tpu.memory_space<vmem>>, %arg4: memref<8x128xf32, #tpu.memory_space<vmem>>) attributes {dimension_semantics = [#tpu.dimension_semantics<parallel>], iteration_bounds = array<i64: 1>, scalar_prefetch = 0 : i64, scratch_operands = 0 : i64, tpu.core_type = #tpu.core_type<tc>, window_params = [{transform_indices = @transform_0, window_bounds = array<i64: 8, 128>}, {pipeline_mode = #tpu.pipeline_mode<synchronous>, transform_indices = @transform_1, window_bounds = array<i64: 1, 128>}, {pipeline_mode = #tpu.pipeline_mode<synchronous>, transform_indices = @transform_2, window_bounds = array<i64: 128, 128>}, {transform_indices = @transform_3, window_bounds = array<i64: 8, 128>}]} {
    %c0 = arith.constant 0 : index
    %c0_0 = arith.constant 0 : index
    %0 = vector.load %arg1[%c0, %c0_0] : memref<8x128xf32, #tpu.memory_space<vmem>>, vector<8x128xf32>
    %c0_1 = arith.constant 0 : index
    %c0_2 = arith.constant 0 : index
    %1 = vector.load %arg2[%c0_1, %c0_2] : memref<1x128xf32, #tpu.memory_space<vmem>>, vector<1x128xf32>
    %2 = arith.mulf %0, %0 : vector<8x128xf32>
    %c0_3 = arith.constant 0 : index
    %c0_4 = arith.constant 0 : index
    %3 = vector.load %arg3[%c0_3, %c0_4] : memref<128x128xf32, #tpu.memory_space<vmem>>, vector<128x128xf32>
    %cst = arith.constant dense<0.000000e+00> : vector<8x128xf32>
    %4 = tpu.matmul %2, %3, %cst {dimension_numbers = #tpu.dot_dimension_numbers<[1], [0], [0], [1], [0, 0, 1, 1], [], []>, precision = #tpu.contract_precision<fp32>} : vector<8x128xf32>, vector<128x128xf32>, vector<8x128xf32> -> vector<8x128xf32>
    %cst_5 = arith.constant 9.99999997E-7 : f32
    %5 = vector.broadcast %cst_5 : f32 to vector<8x128xf32>
    %6 = arith.addf %4, %5 : vector<8x128xf32>
    %7 = math.rsqrt %6 : vector<8x128xf32>
    %8 = arith.mulf %0, %7 : vector<8x128xf32>
    %9 = vector.broadcast %1 : vector<1x128xf32> to vector<8x128xf32>
    %10 = arith.mulf %8, %9 : vector<8x128xf32>
    %c0_6 = arith.constant 0 : index
    %c0_7 = arith.constant 0 : index
    %11 = vector.load %arg4[%c0_6, %c0_7] : memref<8x128xf32, #tpu.memory_space<vmem>>, vector<8x128xf32>
    tpu.vector_store %arg4[%c0_6, %c0_7], %10 {strides = array<i32>} : memref<8x128xf32, #tpu.memory_space<vmem>>, vector<8x128xf32>,
    return
  }
  func.func @transform_0(%arg0: i32) -> (i32, i32) {
    %c0_i32 = arith.constant 0 : i32
    %c0_i32_0 = arith.constant 0 : i32
    return %arg0, %c0_i32 : i32, i32
  }
  func.func @transform_1(%arg0: i32) -> (i32, i32) {
    %c0_i32 = arith.constant 0 : i32
    %c0_i32_0 = arith.constant 0 : i32
    %c0_i32_1 = arith.constant 0 : i32
    return %c0_i32, %c0_i32_0 : i32, i32
  }
  func.func @transform_2(%arg0: i32) -> (i32, i32) {
    %c0_i32 = arith.constant 0 : i32
    %c0_i32_0 = arith.constant 0 : i32
    %c0_i32_1 = arith.constant 0 : i32
    return %c0_i32, %c0_i32_0 : i32, i32
  }
  func.func @transform_3(%arg0: i32) -> (i32, i32) {
    %c0_i32 = arith.constant 0 : i32
    %c0_i32_0 = arith.constant 0 : i32
    return %arg0, %c0_i32 : i32, i32
  }
}

</mosaic_0001>

<bundles_post_ra>
// kernel: tpu_custom_call.1
= control target key start
LH: loop header
LB: loop body
LE: loop exit
PB: predicated region body
PF: predicated region fallthrough
CT: control target
= control target key end

     0   :  { %8 = vsyncpa [#allocation3], 0  ;;  %s844_s0 = inlined_call_operand.hbm [shape: f32[8,128], index: 0, kind: input, shape index: {}]   ;;  %s845_s1 = inlined_call_operand.hbm [shape: f32[1,128], index: 1, kind: input, shape index: {}]   ;;  %s846_s2 = inlined_call_operand.hbm [shape: f32[128,128], index: 2, kind: input, shape index: {}]   ;;  %s847_s3 = inlined_call_operand.hbm [shape: f32[8,128], index: 3, kind: output, shape index: {}]  }
   0x1   :  { %9 = vsyncpa [#allocation6], 0  ;;  %s27_s14 = sshll.u32 %s845_s1, 4  ;;  %s28_s14 = int_to_ptr.hbm [resolvable:$true] %s27_s14 }
   0x2   :  { %10 = vsyncpa [#allocation4], 0  ;;  %s563_s15 = smov [#allocation5]   ;;  %s16_s19 = sshll.u32 %s844_s0, 4  ;;  %s17_s19 = int_to_ptr.hbm [resolvable:$true] %s16_s19 }
   0x3   :  { %s29_s16 = sshll.u32 %s563_s15, 4  ;;  %s564_s20 = smov [#allocation2]   ;;  %s30_s16 = int_to_ptr.vmem [resolvable:$true] %s29_s16 }
   0x4   :  { %32 = dma.hbm_to_vmem [thread:$0]  %s28_s14, 16, %s30_s16, [#allocation6]  }
   0x5   :  { %s18_s21 = sshll.u32 %s564_s20, 4  ;;  %s37_s24 = sshll.u32 %s846_s2, 4  ;;  %s19_s21 = int_to_ptr.vmem [resolvable:$true] %s18_s21  ;;  %s38_s24 = int_to_ptr.hbm [resolvable:$true] %s37_s24 }
   0x6   :  { %21 = dma.hbm_to_vmem [thread:$0]  %s17_s19, 128, %s19_s21, [#allocation3]  }
   0x7   :  { %s565_s1 = smov [#allocation7]   ;;  %s566_s26 = smov 128  }
   0x8   :  { %s39_s25 = sshll.u32 %s565_s1, 4  ;;  %s567_s27 = smov 8   ;;  %s40_s25 = int_to_ptr.vmem [resolvable:$true] %s39_s25 }
   0x9   :  { %45 = dma.hbm_to_vmem [thread:$0]  %s38_s24, 2048, %s40_s25, [#allocation6], %s566_s26, %s566_s26, %s567_s27  }
   0xa   :  { %557 = dma.done.wait [#allocation3], 128  }
   0xb   :  { %558 = vsyncadd [#allocation3], 4294967168 }
   0xc   :  { %559 = dma.done.wait [#allocation6], 2064  }
   0xd   :  { %560 = vsyncadd [#allocation6], 4294965232  ;;  %v76_v0 = vld [vmem:[#allocation7 + $0x78] sm:$0xff]  ;;  %v75_v1 = vld [vmem:[#allocation7 + $0x70] sm:$0xff]  ;;  %s568_s0 = smov [#allocation8]   ;;  %s441_s30 = sshll.u32 %s847_s3, 4  ;;  %s442_s30 = int_to_ptr.hbm [resolvable:$true] %s441_s30 }
   0xe   :  { %v74_v2 = vld [vmem:[#allocation7 + $0x68] sm:$0xff]  ;;  %v598_v3 = vand.u32 4294901760, %v76_v0  ;;  %v600_v4 = vand.u32 4294901760, %v75_v1  ;;  %v73_v6 = vld [vmem:[#allocation7 + $0x60] sm:$0xff]  ;;  %v72_v7 = vld [vmem:[#allocation7 + $0x58] sm:$0xff]  ;;  %s439_s2 = sshll.u32 %s568_s0, 4  ;;  %s440_s2 = int_to_ptr.vmem [resolvable:$true] %s439_s2 }
   0xf   :  { %v602_v5 = vand.u32 4294901760, %v74_v2  ;;  %v71_v8 = vld [vmem:[#allocation7 + $0x50] sm:$0xff]  ;;  %v604_v9 = vand.u32 4294901760, %v73_v6  ;;  %v606_v10 = vand.u32 4294901760, %v72_v7  ;;  %v70_v12 = vld [vmem:[#allocation7 + $0x48] sm:$0xff]  ;;  %v69_v13 = vld [vmem:[#allocation7 + $0x40] sm:$0xff] }
  0x10   :  { %v608_v11 = vand.u32 4294901760, %v71_v8  ;;  %78 = vmatpush.msra.mxu0 %v598_v3  ;;  %v612_v14 = vsub.f32 %v76_v0, %v598_v3  ;;  %v615_v15 = vsub.f32 %v75_v1, %v600_v4  ;;  %v620_v17 = vand.u32 4294901760, %v70_v12  ;;  %274 = vmatpush.msra.mxu3 %v598_v3  ;;  %v68_v21 = vld [vmem:[#allocation7 + $0x38] sm:$0xff]  ;;  %v67_v34 = vld [vmem:[#allocation7 + $0x30] sm:$0xff]  ;;  %v66_v35 = vld [vmem:[#allocation7 + $0x28] sm:$0xff] }
  0x11   :  { %v618_v16 = vsub.f32 %v74_v2, %v602_v5  ;;  %v624_v18 = vsub.f32 %v73_v6, %v604_v9  ;;  %v627_v19 = vsub.f32 %v72_v7, %v606_v10  ;;  %v629_v20 = vand.u32 4294901760, %v69_v13  ;;  %v65_v42 = vld [vmem:[#allocation7 + $0x20] sm:$0xff]  ;;  %v64_v47 = vld [vmem:[#allocation7 + $0x18] sm:$0xff]  ;;  %v63_v53 = vld [vmem:[#allocation7 + $0x10] sm:$0xff] }
  0x12   :  { %80 = vmatpush.msra.mxu0 %v600_v4  ;;  %v120_v22 = vand.u32 4294901760, %v612_v14  ;;  %v126_v23 = vand.u32 4294901760, %v615_v15  ;;  %v636_v25 = vsub.f32 %v71_v8, %v608_v11  ;;  %221 = vmatpush.msra.mxu2 %v612_v14  ;;  %v642_v28 = vsub.f32 %v70_v12, %v620_v17  ;;  %v62_v61 = vld [vmem:[#allocation7 + $0x8] sm:$0xff]  ;;  %v61_v6 = vld [vmem:[#allocation7] sm:$0xff]  ;;  %v722_v7 = vld [vmem:[#allocation2] sm:$0xff] }
  0x13   :  { %v132_v24 = vand.u32 4294901760, %v618_v16  ;;  %v138_v26 = vand.u32 4294901760, %v624_v18  ;;  %v144_v27 = vand.u32 4294901760, %v627_v19  ;;  %276 = vmatpush.msra.mxu3 %v600_v4  ;;  %v655_v32 = vand.u32 4294901760, %v68_v21 }
  0x14   :  { %v121_v29 = vsub.f32 %v612_v14, %v120_v22  ;;  %82 = vmatpush.msra.mxu0 %v602_v5  ;;  %v127_v30 = vsub.f32 %v615_v15, %v126_v23  ;;  %224 = vmatpush.msra.mxu2 %v615_v15  ;;  %v659_v33 = vsub.f32 %v69_v13, %v629_v20  ;;  %v150_v39 = vand.u32 4294901760, %v636_v25 }
  0x15   :  { %v133_v31 = vsub.f32 %v618_v16, %v132_v24  ;;  %278 = vmatpush.msra.mxu3 %v602_v5  ;;  %v139_v38 = vsub.f32 %v624_v18, %v138_v26  ;;  %v145_v40 = vsub.f32 %v627_v19, %v144_v27  ;;  %v156_v41 = vand.u32 4294901760, %v642_v28 }
  0x16   :  { %v122_v36 = vand.u32 4294901760, %v121_v29  ;;  %v128_v37 = vand.u32 4294901760, %v127_v30  ;;  %84 = vmatpush.msra.mxu0 %v604_v9  ;;  %227 = vmatpush.msra.mxu2 %v618_v16  ;;  %v674_v44 = vand.u32 4294901760, %v67_v34  ;;  %v677_v45 = vsub.f32 %v68_v21, %v655_v32 }
  0x17   :  { %280 = vmatpush.msra.mxu3 %v604_v9  ;;  %v134_v43 = vand.u32 4294901760, %v133_v31  ;;  %v679_v46 = vand.u32 4294901760, %v66_v35  ;;  %v162_v48 = vand.u32 4294901760, %v659_v33  ;;  %v140_v49 = vand.u32 4294901760, %v139_v38 }
  0x18   :  { %123 = vmatpush.msra.mxu1 %v122_v36  ;;  %86 = vmatpush.msra.mxu0 %v606_v10  ;;  %v151_v50 = vsub.f32 %v636_v25, %v150_v39  ;;  %v689_v51 = vsub.f32 %v67_v34, %v674_v44  ;;  %v691_v52 = vand.u32 4294901760, %v65_v42  ;;  %v157_v54 = vsub.f32 %v642_v28, %v156_v41 }
  0x19   :  { %230 = vmatpush.msra.mxu2 %v624_v18  ;;  %282 = vmatpush.msra.mxu3 %v606_v10  ;;  %v696_v55 = vand.u32 4294901760, %v64_v47  ;;  %v146_v56 = vand.u32 4294901760, %v145_v40  ;;  %v168_v57 = vand.u32 4294901760, %v677_v45  ;;  %v703_v58 = vsub.f32 %v66_v35, %v679_v46 }
  0x1a   :  { %129 = vmatpush.msra.mxu1 %v128_v37  ;;  %88 = vmatpush.msra.mxu0 %v608_v11  ;;  %v163_v59 = vsub.f32 %v659_v33, %v162_v48  ;;  %v708_v60 = vand.u32 4294901760, %v63_v53  ;;  %v152_v62 = vand.u32 4294901760, %v151_v50  ;;  %v174_v63 = vand.u32 4294901760, %v689_v51 }
  0x1b   :  { %233 = vmatpush.msra.mxu2 %v627_v19  ;;  %284 = vmatpush.msra.mxu3 %v608_v11  ;;  %v715_v0 = vsub.f32 %v65_v42, %v691_v52  ;;  %v158_v1 = vand.u32 4294901760, %v157_v54  ;;  %v718_v2 = vsub.f32 %v64_v47, %v696_v55  ;;  %v169_v8 = vsub.f32 %v677_v45, %v168_v57 }
  0x1c   :  { %135 = vmatpush.msra.mxu1 %v134_v43  ;;  %90 = vmatpush.msra.mxu0 %v620_v17  ;;  %v180_v12 = vand.u32 4294901760, %v703_v58  ;;  %v729_v13 = vand.u32 4294901760, %v62_v61  ;;  %v60_v21 = vmul.f32 %v722_v7, %v722_v7  ;;  %v164_v29 = vand.u32 4294901760, %v163_v59 }
  0x1d   :  { %236 = vmatpush.msra.mxu2 %v636_v25  ;;  %286 = vmatpush.msra.mxu3 %v620_v17  ;;  %v734_v30 = vsub.f32 %v63_v53, %v708_v60  ;;  %v175_v31 = vsub.f32 %v689_v51, %v174_v63  ;;  %v186_v34 = vand.u32 4294901760, %v715_v0  ;;  %v743_v35 = vand.u32 4294901760, %v61_v6 }
  0x1e   :  { %141 = vmatpush.msra.mxu1 %v140_v49  ;;  %92 = vmatpush.msra.mxu0 %v629_v20  ;;  %v745_v36 = vand.u32 4294901760, %v60_v21  ;;  %v192_v37 = vand.u32 4294901760, %v718_v2  ;;  %v170_v38 = vand.u32 4294901760, %v169_v8  ;;  %v181_v40 = vsub.f32 %v703_v58, %v180_v12 }
  0x1f   :  { %239 = vmatpush.msra.mxu2 %v642_v28  ;;  %288 = vmatpush.msra.mxu3 %v629_v20  ;;  %v755_v42 = vsub.f32 %v62_v61, %v729_v13  ;;  %v176_v47 = vand.u32 4294901760, %v175_v31  ;;  %v187_v49 = vsub.f32 %v715_v0, %v186_v34  ;;  %v198_v50 = vand.u32 4294901760, %v734_v30 }
  0x20   :  { %147 = vmatpush.msra.mxu1 %v146_v56  ;;  %94 = vmatpush.msra.mxu0 %v655_v32  ;;  %v110_v43 = vsub.f32 %v60_v21, %v745_v36  ;;  %v766_v53 = vsub.f32 %v61_v6, %v743_v35  ;;  %v182_v54 = vand.u32 4294901760, %v181_v40  ;;  %v193_v56 = vsub.f32 %v718_v2, %v192_v37 }
  0x21   :  { %242 = vmatpush.msra.mxu2 %v659_v33  ;;  %290 = vmatpush.msra.mxu3 %v655_v32  ;;  %v204_v59 = vand.u32 4294901760, %v755_v42 }
  0x22   :  { %153 = vmatpush.msra.mxu1 %v152_v62  ;;  %96 = vmatpush.msra.mxu0 %v674_v44  ;;  %v111_v61 = vand.u32 4294901760, %v110_v43  ;;  %v188_v62 = vand.u32 4294901760, %v187_v49  ;;  %v210_v6 = vand.u32 4294901760, %v766_v53  ;;  %v194_v8 = vand.u32 4294901760, %v193_v56 }
  0x23   :  { %245 = vmatpush.msra.mxu2 %v677_v45  ;;  %292 = vmatpush.msra.mxu3 %v674_v44  ;;  %v205_v21 = vsub.f32 %v755_v42, %v204_v59 }
  0x24   :  { %159 = vmatpush.msra.mxu1 %v158_v1  ;;  %98 = vmatpush.msra.mxu0 %v679_v46  ;;  %v199_v1 = vsub.f32 %v734_v30, %v198_v50 }
  0x25   :  { %248 = vmatpush.msra.mxu2 %v689_v51  ;;  %294 = vmatpush.msra.mxu3 %v679_v46  ;;  %v206_v40 = vand.u32 4294901760, %v205_v21 }
  0x26   :  { %165 = vmatpush.msra.mxu1 %v164_v29  ;;  %100 = vmatpush.msra.mxu0 %v691_v52  ;;  %v112_v29 = vsub.f32 %v110_v43, %v111_v61  ;;  %v200_v31 = vand.u32 4294901760, %v199_v1 }
  0x27   :  { %251 = vmatpush.msra.mxu2 %v703_v58  ;;  %296 = vmatpush.msra.mxu3 %v691_v52 }
  0x28   :  { %171 = vmatpush.msra.mxu1 %v170_v38  ;;  %102 = vmatpush.msra.mxu0 %v696_v55  ;;  %v211_v38 = vsub.f32 %v766_v53, %v210_v6 }
  0x29   :  { %254 = vmatpush.msra.mxu2 %v715_v0  ;;  %298 = vmatpush.msra.mxu3 %v696_v55 }
  0x2a   :  { %177 = vmatpush.msra.mxu1 %v176_v47  ;;  %104 = vmatpush.msra.mxu0 %v708_v60  ;;  %v113_v47 = vand.u32 4294901760, %v112_v29  ;;  %v212_v49 = vand.u32 4294901760, %v211_v38 }
  0x2b   :  { %257 = vmatpush.msra.mxu2 %v718_v2  ;;  %300 = vmatpush.msra.mxu3 %v708_v60 }
  0x2c   :  { %183 = vmatpush.msra.mxu1 %v182_v54  ;;  %106 = vmatpush.msra.mxu0 %v729_v13 }
  0x2d   :  { %260 = vmatpush.msra.mxu2 %v734_v30  ;;  %302 = vmatpush.msra.mxu3 %v729_v13 }
  0x2e   :  { %189 = vmatpush.msra.mxu1 %v188_v62  ;;  %108 = vmatpush.msra.mxu0 %v743_v35 }
  0x2f   :  { %263 = vmatpush.msra.mxu2 %v755_v42  ;;  %304 = vmatpush.msra.mxu3 %v743_v35 }
  0x30   :  { %315 = vmatpush.msrb.mxu0 %v120_v22  ;;  %195 = vmatpush.msra.mxu1 %v194_v8 }
  0x31   :  { %266 = vmatpush.msra.mxu2 %v766_v53  ;;  %308 = vmatmul.f32.vlgmr.msra.gmra.mxu3 %v111_v61 }
  0x32   :  { %319 = vmatpush.msrb.mxu0 %v126_v23  ;;  %201 = vmatpush.msra.mxu1 %v200_v31 }
  0x33   :  { %269 = vmatmul.f32.vlgmr.msra.gmra.mxu2 %v110_v43  ;;  %114 = vmatmul.f32.vlgmr.msra.gmra.mxu0 %v113_v47 }
  0x34   :  { %323 = vmatpush.msrb.mxu0 %v132_v24  ;;  %207 = vmatpush.msra.mxu1 %v206_v40 }
  0x36   :  { %327 = vmatpush.msrb.mxu0 %v138_v26  ;;  %213 = vmatpush.msra.mxu1 %v212_v49 }
  0x37   :  { %215 = vmatmul.f32.vlgmr.msra.gmra.mxu1 %v745_v36 }
  0x38   :  { %382 = vmatpush.msrb.mxu1 %v598_v3  ;;  %331 = vmatpush.msrb.mxu0 %v144_v27  ;;  %v458_v27 = vld [vmem:[#allocation5] ss:$0 sm:$0xff] }
  0x3a   :  { %384 = vmatpush.msrb.mxu1 %v600_v4  ;;  %335 = vmatpush.msrb.mxu0 %v150_v39 }
  0x3c   :  { %386 = vmatpush.msrb.mxu1 %v602_v5  ;;  %339 = vmatpush.msrb.mxu0 %v156_v41 }
  0x3e   :  { %388 = vmatpush.msrb.mxu1 %v604_v9  ;;  %343 = vmatpush.msrb.mxu0 %v162_v48 }
  0x40   :  { %390 = vmatpush.msrb.mxu1 %v606_v10  ;;  %347 = vmatpush.msrb.mxu0 %v168_v57 }
  0x42   :  { %392 = vmatpush.msrb.mxu1 %v608_v11  ;;  %351 = vmatpush.msrb.mxu0 %v174_v63 }
  0x44   :  { %394 = vmatpush.msrb.mxu1 %v620_v17  ;;  %355 = vmatpush.msrb.mxu0 %v180_v12 }
  0x46   :  { %396 = vmatpush.msrb.mxu1 %v629_v20  ;;  %359 = vmatpush.msrb.mxu0 %v186_v34 }
  0x48   :  { %398 = vmatpush.msrb.mxu1 %v655_v32  ;;  %363 = vmatpush.msrb.mxu0 %v192_v37 }
  0x4a   :  { %400 = vmatpush.msrb.mxu1 %v674_v44  ;;  %367 = vmatpush.msrb.mxu0 %v198_v50 }
  0x4c   :  { %402 = vmatpush.msrb.mxu1 %v679_v46  ;;  %371 = vmatpush.msrb.mxu0 %v204_v59 }
  0x4e   :  { %404 = vmatpush.msrb.mxu1 %v691_v52  ;;  %375 = vmatpush.msrb.mxu0 %v210_v6 }
  0x4f   :  { %377 = vmatmul.f32.vlgmr.msrb.gmra.mxu0 %v745_v36 }
  0x50   :  { %406 = vmatpush.msrb.mxu1 %v696_v55 }
  0x52   :  { %408 = vmatpush.msrb.mxu1 %v708_v60 }
  0x54   :  { %410 = vmatpush.msrb.mxu1 %v729_v13 }
  0x56   :  { %412 = vmatpush.msrb.mxu1 %v743_v35 }
  0x57   :  { %414 = vmatmul.f32.vlgmr.msrb.gmra.mxu1 %v745_v36 }
  0xb0   :  { %v115_v3 = vpop.f32.mrf.mxu0 }
  0xb1   :  { %v116_v4 = vadd.f32 1e-06, %v115_v3 }
  0xb4   :  { %v216_v5 = vpop.f32.mrf.mxu1  ;;  %v309_v14 = vpop.f32.mrf.mxu3 }
  0xb5   :  { %v217_v9 = vadd.f32 %v216_v5, %v116_v4 }
  0xb6   :  { %v270_v10 = vpop.f32.mrf.mxu2 }
  0xb7   :  { %v271_v11 = vadd.f32 %v270_v10, %v217_v9 }
  0xb9   :  { %v310_v15 = vadd.f32 %v309_v14, %v271_v11 }
  0xcc   :  { %v378_v16 = vpop.f32.mrf.mxu0 }
  0xcd   :  { %v379_v17 = vadd.f32 %v378_v16, %v310_v15 }
  0xd4   :  { %v415_v18 = vpop.f32.mrf.mxu1 }
  0xd5   :  { %v416_v19 = vadd.f32 %v415_v18, %v379_v17 }
  0xd7   :  { %459 = vrsqrt.f32 %v416_v19  ;;  %vm424_vm1 = vweird.f32 %v416_v19 }
  0xdd   :  { %v460_v20 = vpop.eup %459 }
  0xde   :  { %v419_v22 = vmul.f32 %v460_v20, %v416_v19  ;;  %vm425_vm0 = vweird.f32 %v460_v20 }
  0xdf   :  { %vm426_vm2 = vmor %vm424_vm1, %vm425_vm0 }
  0xe0   :  { %v420_v23 = vmul.f32 %v460_v20, %v419_v22 }
  0xe2   :  { %v421_v24 = vmul.f32 0.5, %v420_v23 }
  0xe4   :  { %v422_v25 = vsub.f32 1.5, %v421_v24 }
  0xe6   :  { %v423_v26 = vmul.f32 %v460_v20, %v422_v25 }
  0xe8   :  { %v427_v28 = vsel %vm426_vm2, %v460_v20, %v423_v26 }
  0xe9   :  { %v428_v32 = vmul.f32 %v427_v28, %v722_v7 }
  0xeb   :  { %v432_v33 = vmul.f32 %v458_v27, %v428_v32 }
  0xed   :  { %433 = vst [vmem:[#allocation8] sm:$0xff] %v432_v33 }
  0xee   :  { %444 = dma.vmem_to_hbm [thread:$0]  %s440_s2, 128, %s442_s30, [#allocation4]  }
  0xef   :  { %561 = dma.done.wait [#allocation4], 128  }
  0xf0   :  { %562 = vsyncadd [#allocation4], 4294967168 }
  0xf1   :  { %449 = vsyncpa [#allocation3], 1 }
  0xf2   :  { %450 = vsyncpa [#allocation6], 1 }
  0xf3   :  { %451 = vsyncpa [#allocation4], 1 }

</bundles_post_ra>
